<compile_context>
chip_gen: v6e
topology: v6e:2x2x1
jax: 0.10.0
libtpu: 0.0.40
codegen_flags: <defaults>
</compile_context>

<pallas_src>
import functools

import jax
import jax.numpy as jnp
from jax import lax
from jax.experimental import pallas as pl
from jax.experimental.pallas import tpu as pltpu


# ----------------------------------------------------------------------------
# Kernel 1: fused Linear (+ optional ReLU), tiled over (batch, out) dims.
# ----------------------------------------------------------------------------
def _linear_kernel(x_ref, w_ref, b_ref, o_ref, *, relu):
    y = jnp.dot(x_ref[...], w_ref[...], preferred_element_type=jnp.float32)
    y = y + b_ref[...]
    if relu:
        y = jnp.maximum(y, 0.0)
    o_ref[...] = y.astype(o_ref.dtype)


def linear(x, w, b, relu=True, tile_out=512, tile_m=256):
    n, din = x.shape
    dout = w.shape[1]
    # output tile: as wide as possible (lane-dense stores) while dividing dout
    tn = tile_out if dout % tile_out == 0 else dout

    x_p = x
    npad = n
    pad = -n % 8
    if pad:
        x_p = jnp.pad(x_p, ((0, pad), (0, 0)))
        npad += pad
    if npad > tile_m:
        extra = -npad % tile_m
        if extra:
            x_p = jnp.pad(x_p, ((0, extra), (0, 0)))
            npad += extra
        tm = tile_m
    else:
        tm = npad

    out = pl.pallas_call(
        functools.partial(_linear_kernel, relu=relu),
        out_shape=jax.ShapeDtypeStruct((npad, dout), jnp.float32),
        grid=(npad // tm, dout // tn),
        in_specs=[
            pl.BlockSpec((tm, din), lambda i, j: (i, 0)),
            pl.BlockSpec((din, tn), lambda i, j: (0, j)),
            pl.BlockSpec((1, tn), lambda i, j: (0, j)),
        ],
        out_specs=pl.BlockSpec((tm, tn), lambda i, j: (i, j)),
        compiler_params=pltpu.CompilerParams(
            dimension_semantics=("parallel", "parallel")),
    )(x_p, w, b)
    return out[:n]


# ----------------------------------------------------------------------------
# Kernel 2: 5-layer 3x3 conv (padding=1, stride=1) + ELU stack, TB samples per
# grid step.  Per layer the conv is 9 flat-shifted matmuls over a zero-padded
# flat activation buffer; the taps accumulate in registers and only the two
# width-edge taps need a mask multiply.
# ----------------------------------------------------------------------------
def _conv_stack_kernel(x_ref, *refs, H, W, TB, channels):
    nl = len(channels) - 1
    o_ref = refs[2 * nl]
    pbuf = refs[2 * nl + 1]            # (PAD + H*W + PAD, Cmax) padded activation
    hw = H * W
    c0 = channels[0]
    PAD = W + 1

    # Zero the scratch once per grid step: guarantees the W+1 padding rows at
    # both ends read as the conv's zero padding for every sample in this step.
    pbuf[...] = jnp.zeros_like(pbuf)

    # width-edge validity masks (output coordinates), shared by all samples.
    col = lax.broadcasted_iota(jnp.int32, (hw, 1), 0) % W
    m_left = (col >= 1).astype(jnp.float32)        # tap dx=0 invalid at w == 0
    m_right = (col <= W - 2).astype(jnp.float32)   # tap dx=2 invalid at w == W-1

    @pl.loop(0, TB)
    def _per_sample(bidx):
        # place this sample's embedding in the interior of the padded buffer
        pbuf[PAD:PAD + hw, :c0] = x_ref[bidx]
        for li in range(nl):
            w_ref = refs[2 * li]
            b_ref = refs[2 * li + 1]
            cin, cout = channels[li], channels[li + 1]
            acc = jnp.zeros((hw, cout), jnp.float32)
            for dy in range(3):
                for dx in range(3):
                    s = (dy - 1) * W + (dx - 1)
                    slab = pbuf[PAD + s:PAD + s + hw, :cin]
                    z = jnp.dot(slab, w_ref[dy, dx],
                                preferred_element_type=jnp.float32)
                    if dx == 0:
                        z = z * m_left
                    elif dx == 2:
                        z = z * m_right
                    acc = acc + z
            y = acc + b_ref[...]
            # ELU(alpha=1) after every conv (incl. the last).  exp(min(y,0))-1
            # is used instead of expm1 (not all elementwise primitives lower).
            y = jnp.where(y > 0.0, y, jnp.exp(jnp.minimum(y, 0.0)) - 1.0)
            if li + 1 < nl:
                pbuf[PAD:PAD + hw, :cout] = y
            else:
                o_ref[bidx] = y


def conv2d_stack(x_flat, weights, biases, H, W, TB=8):
    """x_flat: (N, H*W, C0) float32 -> (N, H*W, C_last) float32."""
    n, hw, c0 = x_flat.shape
    assert hw == H * W
    channels = [c0] + [w.shape[-1] for w in weights]
    c_last = channels[-1]
    c_max = max(channels)

    pad = -n % TB
    if pad:
        x_flat = jnp.pad(x_flat, ((0, pad), (0, 0), (0, 0)))
    npad = n + pad

    in_specs = [pl.BlockSpec((TB, hw, c0), lambda i: (i, 0, 0))]
    args = [x_flat]
    for w, b in zip(weights, biases):
        in_specs.append(pl.BlockSpec(w.shape, lambda i: (0, 0, 0, 0)))
        in_specs.append(pl.BlockSpec(b.shape, lambda i: (0, 0)))
        args += [w, b]

    out = pl.pallas_call(
        functools.partial(_conv_stack_kernel, H=H, W=W, TB=TB, channels=channels),
        out_shape=jax.ShapeDtypeStruct((npad, hw, c_last), jnp.float32),
        grid=(npad // TB,),
        in_specs=in_specs,
        out_specs=pl.BlockSpec((TB, hw, c_last), lambda i: (i, 0, 0)),
        scratch_shapes=[pltpu.VMEM((hw + 2 * (W + 1), c_max), jnp.float32)],
        compiler_params=pltpu.CompilerParams(dimension_semantics=("parallel",)),
    )(*args)
    return out[:n]


# ----------------------------------------------------------------------------
# Kernel 3: lt_cnn message tower, TB samples per grid step.
#   conv1(k=7)+ReLU, pool3, conv2(k=7)+ReLU, pool3,
#   conv3..6(k=3)+ReLU, pool3  ->  (5, 64) per sample.
# ----------------------------------------------------------------------------
def _msg_kernel(x_ref, *refs, TB):
    o_ref, buf_ref = refs[-2], refs[-1]
    wb = refs[:-2]

    def conv_relu(xv, w_ref, b_ref):
        k = w_ref.shape[0]
        lin = xv.shape[0]
        lout = lin - k + 1
        cout = w_ref.shape[2]
        acc = jnp.zeros((lout, cout), jnp.float32)
        for t in range(k):
            acc = acc + jnp.dot(xv[t:t + lout, :], w_ref[t],
                                preferred_element_type=jnp.float32)
        return jnp.maximum(acc + b_ref[...], 0.0)

    def maxpool3(xv):
        lin = xv.shape[0]
        lp = (lin - 3) // 3 + 1
        buf_ref[0:lin, :] = xv
        a = buf_ref[pl.ds(0, lp, stride=3), :]
        b = buf_ref[pl.ds(1, lp, stride=3), :]
        c = buf_ref[pl.ds(2, lp, stride=3), :]
        return jnp.maximum(jnp.maximum(a, b), c)

    @pl.loop(0, TB)
    def _per_sample(i):
        x = x_ref[i]                                  # (256, 32)
        x = maxpool3(conv_relu(x, wb[0], wb[1]))      # 250 -> 83
        x = maxpool3(conv_relu(x, wb[2], wb[3]))      # 77  -> 25
        x = conv_relu(x, wb[4], wb[5])                # 23
        x = conv_relu(x, wb[6], wb[7])                # 21
        x = conv_relu(x, wb[8], wb[9])                # 19
        x = conv_relu(x, wb[10], wb[11])              # 17
        x = maxpool3(x)                               # 5
        o_ref[i] = x                                  # (5, 64)


def msg_cnn(char_emb, conv_ws, conv_bs, TB=8):
    """char_emb: (N, L=256, E=32) -> (N, 5, 64)."""
    n, l, e = char_emb.shape
    hdim = conv_ws[0].shape[-1]

    pad = -n % TB
    if pad:
        char_emb = jnp.pad(char_emb, ((0, pad), (0, 0), (0, 0)))
    npad = n + pad

    in_specs = [pl.BlockSpec((TB, l, e), lambda i: (i, 0, 0))]
    args = [char_emb]
    for w, b in zip(conv_ws, conv_bs):
        in_specs.append(pl.BlockSpec(w.shape, lambda i: (0, 0, 0)))
        in_specs.append(pl.BlockSpec(b.shape, lambda i: (0, 0)))
        args += [w, b]

    out = pl.pallas_call(
        functools.partial(_msg_kernel, TB=TB),
        out_shape=jax.ShapeDtypeStruct((npad, 5, hdim), jnp.float32),
        grid=(npad // TB,),
        in_specs=in_specs,
        out_specs=pl.BlockSpec((TB, 5, hdim), lambda i: (i, 0, 0)),
        scratch_shapes=[pltpu.VMEM((l, hdim), jnp.float32)],
        compiler_params=pltpu.CompilerParams(dimension_semantics=("parallel",)),
    )(*args)
    return out[:n]


# ----------------------------------------------------------------------------
# Glue: Crop (grid_sample) as an exact gather, embedding lookups, full forward.
# ----------------------------------------------------------------------------
def crop_gather(glyphs, coords, H, W, crop_dim):
    """Exact Crop.forward for odd H, W and integer coordinates:
    bilinear grid_sample at integer grid points + round == zero-padded gather.
    (torch grid: delta * arange(-crop_dim//2, crop_dim//2) -> offsets [-5..3].)"""
    n = glyphs.shape[0]
    x = jnp.round(coords[:, 0]).astype(jnp.int32)
    y = jnp.round(coords[:, 1]).astype(jnp.int32)
    offs = jnp.arange(-crop_dim // 2, crop_dim // 2, dtype=jnp.int32)
    rows = y[:, None] + offs[None, :]
    cols = x[:, None] + offs[None, :]
    rv = (rows >= 0) & (rows < H)
    cv = (cols >= 0) & (cols < W)
    rc = jnp.clip(rows, 0, H - 1)
    cc = jnp.clip(cols, 0, W - 1)
    g = glyphs[jnp.arange(n)[:, None, None], rc[:, :, None], cc[:, None, :]]
    return jnp.where(rv[:, :, None] & cv[:, None, :], g, 0)


def init_params(key, H, W, blstats_size, max_glyph,
                embedding_dim=64, hidden_dim=1024, crop_dim=9, num_layers=5,
                msg_hdim=64, msg_edim=32, num_chars=256):
    kit = iter(jax.random.split(key, 64))

    def dense(shape, fan_in):
        return jax.random.normal(next(kit), shape, jnp.float32) / jnp.sqrt(float(fan_in))

    K, M, Y, L = embedding_dim, 16, 8, num_layers
    in_ch = [K] + [M] * (L - 1)
    out_ch = [M] * (L - 1) + [Y]

    p = {}
    p["glyph_embed"] = dense((max_glyph, K), 1.0)
    p["conv_w"] = [dense((3, 3, in_ch[i], out_ch[i]), 9 * in_ch[i]) for i in range(L)]
    p["conv_b"] = [dense((1, out_ch[i]), 100.0) for i in range(L)]
    p["crop_conv_w"] = [dense((3, 3, in_ch[i], out_ch[i]), 9 * in_ch[i]) for i in range(L)]
    p["crop_conv_b"] = [dense((1, out_ch[i]), 100.0) for i in range(L)]
    p["bl_w1"] = dense((blstats_size, K), blstats_size)
    p["bl_b1"] = dense((1, K), 100.0)
    p["bl_w2"] = dense((K, K), K)
    p["bl_b2"] = dense((1, K), 100.0)
    emb = dense((num_chars, msg_edim), 1.0)
    p["char_embed"] = emb.at[0].set(0.0)  # padding_idx = PAD_CHAR = 0
    ks = [7, 7, 3, 3, 3, 3]
    cs = [msg_edim] + [msg_hdim] * 6
    p["msg_conv_w"] = [dense((ks[i], cs[i], cs[i + 1]), ks[i] * cs[i]) for i in range(6)]
    p["msg_conv_b"] = [dense((1, msg_hdim), 100.0) for _ in range(6)]
    p["msg_fc1_w"] = dense((5 * msg_hdim, 2 * msg_hdim), 5 * msg_hdim)
    p["msg_fc1_b"] = dense((1, 2 * msg_hdim), 100.0)
    p["msg_fc2_w"] = dense((2 * msg_hdim, msg_hdim), 2 * msg_hdim)
    p["msg_fc2_b"] = dense((1, msg_hdim), 100.0)
    out_dim = K + crop_dim * crop_dim * Y + H * W * Y + msg_hdim
    p["fc1_w"] = dense((out_dim, hidden_dim), out_dim)
    p["fc1_b"] = dense((1, hidden_dim), 100.0)
    p["fc2_w"] = dense((hidden_dim, hidden_dim), hidden_dim)
    p["fc2_b"] = dense((1, hidden_dim), 100.0)
    return p


def forward(params, glyphs, blstats, messages, H, W, crop_dim=9):
    T, B = glyphs.shape[:2]
    N = T * B
    g = glyphs.reshape(N, H, W).astype(jnp.int32)
    bl = blstats.reshape(N, -1).astype(jnp.float32)
    msg = messages.reshape(N, -1).astype(jnp.int32)
    coords = bl[:, :2]

    # blstats MLP: Linear+ReLU, Linear+ReLU   (dropout p=0 -> identity)
    h1 = linear(bl, params["bl_w1"], params["bl_b1"], relu=True)
    blstats_emb = linear(h1, params["bl_w2"], params["bl_b2"], relu=True)

    # crop branch
    crop = crop_gather(g, coords, H, W, crop_dim)                       # (N, 9, 9) int32
    crop_emb = jnp.take(params["glyph_embed"], crop, axis=0)            # (N, 9, 9, 64)
    crop_rep = conv2d_stack(crop_emb.reshape(N, crop_dim * crop_dim, -1),
                            params["crop_conv_w"], params["crop_conv_b"],
                            crop_dim, crop_dim).reshape(N, -1)          # (N, 648)

    # full-glyph branch
    gl_emb = jnp.take(params["glyph_embed"], g, axis=0)                 # (N, H, W, 64)
    gl_rep = conv2d_stack(gl_emb.reshape(N, H * W, -1),
                          params["conv_w"], params["conv_b"],
                          H, W).reshape(N, -1)                          # (N, H*W*8)

    # message branch (lt_cnn)
    ch_emb = jnp.take(params["char_embed"], msg, axis=0)                # (N, 256, 32)
    pooled = msg_cnn(ch_emb, params["msg_conv_w"], params["msg_conv_b"])  # (N, 5, 64)
    mh = linear(pooled.reshape(N, -1), params["msg_fc1_w"], params["msg_fc1_b"], relu=True)
    char_rep = linear(mh, params["msg_fc2_w"], params["msg_fc2_b"], relu=False)  # (N, 64)

    st = jnp.concatenate([blstats_emb, crop_rep, gl_rep, char_rep], axis=1)
    st = linear(st, params["fc1_w"], params["fc1_b"], relu=True)
    st = linear(st, params["fc2_w"], params["fc2_b"], relu=True)

    # TODO(synk): nn.LSTM core path (use_lstm=True) not implemented; this models use_lstm=False.
    core_output = st.reshape(T, B, -1)
    return core_output, ()


if __name__ == "__main__":
    T, B = 2, 8
    H, W = 13, 13        # odd sizes -> Crop's grid_sample reduces to an exact integer gather
    CROP = 9
    BLSTATS = 26
    MSG_LEN = 256        # required by the lt_cnn head (flatten -> 5 * msg_hdim)
    MAX_GLYPH = 128      # synthetic stand-in for nethack.MAX_GLYPH

    params = init_params(jax.random.PRNGKey(0), H, W, BLSTATS, MAX_GLYPH)

    kg, kb, km = jax.random.split(jax.random.PRNGKey(0), 3)
    glyphs = jax.random.randint(kg, (T, B, H, W), 0, MAX_GLYPH, dtype=jnp.int32)
    blstats = jax.random.randint(kb, (T, B, BLSTATS), 0, min(H, W),
                                 dtype=jnp.int32).astype(jnp.float32)
    messages = jax.random.randint(km, (T, B, MSG_LEN), 0, 256, dtype=jnp.int32)

    out, core_state = forward(params, glyphs, blstats, messages, H, W, CROP)
    out = jax.block_until_ready(out)
    assert out.shape == (T, B, 1024), out.shape
    assert bool(jnp.all(jnp.isfinite(out)))
    print("KERNEL_OK")
</pallas_src>

<mosaic_0001>
module attributes {stable_mosaic.version = 11 : i64} {
  func.func @_linear_kernel(%arg0: i32, %arg1: i32, %arg2: memref<16x26xf32, #tpu.memory_space<vmem>>, %arg3: memref<26x64xf32, #tpu.memory_space<vmem>>, %arg4: memref<1x64xf32, #tpu.memory_space<vmem>>, %arg5: memref<16x64xf32, #tpu.memory_space<vmem>>) attributes {dimension_semantics = [#tpu.dimension_semantics<parallel>, #tpu.dimension_semantics<parallel>], iteration_bounds = array<i64: 1, 1>, scalar_prefetch = 0 : i64, scratch_operands = 0 : i64, tpu.core_type = #tpu.core_type<tc>, window_params = [{transform_indices = @transform_0, window_bounds = array<i64: 16, 26>}, {transform_indices = @transform_1, window_bounds = array<i64: 26, 64>}, {transform_indices = @transform_2, window_bounds = array<i64: 1, 64>}, {transform_indices = @transform_3, window_bounds = array<i64: 16, 64>}]} {
    %c0 = arith.constant 0 : index
    %c0_0 = arith.constant 0 : index
    %0 = vector.load %arg2[%c0, %c0_0] : memref<16x26xf32, #tpu.memory_space<vmem>>, vector<16x26xf32>
    %c0_1 = arith.constant 0 : index
    %c0_2 = arith.constant 0 : index
    %1 = vector.load %arg3[%c0_1, %c0_2] : memref<26x64xf32, #tpu.memory_space<vmem>>, vector<26x64xf32>
    %cst = arith.constant dense<0.000000e+00> : vector<16x64xf32>
    %2 = tpu.matmul %0, %1, %cst {dimension_numbers = #tpu.dot_dimension_numbers<[1], [0], [0], [1], [0, 0, 1, 1], [], []>} : vector<16x26xf32>, vector<26x64xf32>, vector<16x64xf32> -> vector<16x64xf32>
    %c0_3 = arith.constant 0 : index
    %c0_4 = arith.constant 0 : index
    %3 = vector.load %arg4[%c0_3, %c0_4] : memref<1x64xf32, #tpu.memory_space<vmem>>, vector<1x64xf32>
    %4 = vector.broadcast %3 : vector<1x64xf32> to vector<16x64xf32>
    %5 = arith.addf %2, %4 : vector<16x64xf32>
    %cst_5 = arith.constant 0.000000e+00 : f32
    %6 = vector.broadcast %cst_5 : f32 to vector<16x64xf32>
    %7 = arith.maximumf %5, %6 : vector<16x64xf32>
    %c0_6 = arith.constant 0 : index
    %c0_7 = arith.constant 0 : index
    %8 = vector.load %arg5[%c0_6, %c0_7] : memref<16x64xf32, #tpu.memory_space<vmem>>, vector<16x64xf32>
    tpu.vector_store %arg5[%c0_6, %c0_7], %7 {strides = array<i32>} : memref<16x64xf32, #tpu.memory_space<vmem>>, vector<16x64xf32>,
    return
  }
  func.func @transform_0(%arg0: i32, %arg1: i32) -> (i32, i32) {
    %c0_i32 = arith.constant 0 : i32
    %c0_i32_0 = arith.constant 0 : i32
    return %arg0, %c0_i32 : i32, i32
  }
  func.func @transform_1(%arg0: i32, %arg1: i32) -> (i32, i32) {
    %c0_i32 = arith.constant 0 : i32
    %c0_i32_0 = arith.constant 0 : i32
    return %c0_i32, %arg1 : i32, i32
  }
  func.func @transform_2(%arg0: i32, %arg1: i32) -> (i32, i32) {
    %c0_i32 = arith.constant 0 : i32
    %c0_i32_0 = arith.constant 0 : i32
    return %c0_i32, %arg1 : i32, i32
  }
  func.func @transform_3(%arg0: i32, %arg1: i32) -> (i32, i32) {
    %c0_i32 = arith.constant 0 : i32
    return %arg0, %arg1 : i32, i32
  }
}

</mosaic_0001>

<bundles_post_ra>
// kernel: tpu_custom_call.1
= control target key start
LH: loop header
LB: loop body
LE: loop exit
PB: predicated region body
PF: predicated region fallthrough
CT: control target
= control target key end

     0   :  { %8 = vsyncpa [#allocation3], 0  ;;  %s305_s0 = inlined_call_operand.hbm [shape: f32[16,26], index: 0, kind: input, shape index: {}]   ;;  %s306_s1 = inlined_call_operand.hbm [shape: f32[26,64], index: 1, kind: input, shape index: {}]   ;;  %s307_s2 = inlined_call_operand.vmem [shape: f32[1,64], index: 2, kind: input, shape index: {}]   ;;  %s308_s3 = inlined_call_operand.hbm [shape: f32[16,64], index: 3, kind: output, shape index: {}]  }
   0x1   :  { %9 = vsyncpa [#allocation6], 0 }
   0x2   :  { %10 = vsyncpa [#allocation4], 0  ;;  %s257_s12 = smov [#allocation2]  }
   0x3   :  { %s16_s13 = sshll.u32 %s257_s12, 4  ;;  %s17_s13 = int_to_ptr.vmem [resolvable:$true] %s16_s13 }
   0x4   :  { %s199_s14 = scalar_lea.vmem %s17_s13, 256  ;;  %p204_p1 = scmp.lt.s32.totalorder %s17_s13, %s17_s13 }
   0x5   :  { %p200_p0 = scmp.ne.s32.totalorder %s17_s13, %s199_s14  ;;  %p205_p2 = scmp.lt.s32.totalorder %s199_s14, %s199_s14 }
   0x7   :  { %p206_p3 = por %p205_p2, %p204_p1 }
   0x9   :  { %p207_p4 = pnand %p206_p3, %p200_p0 }
   0xb   :  { %210 = shalt.err (!%p207_p4)
}
   0xc   :  { %s258_s15 = smov 128   ;;  %s259_s16 = smov 8  }
   0xd   :  { %22 = dma.hbm_to_vmem [thread:$0]  %s305_s0, 256, %s17_s13, [#allocation3], %s258_s15, %s258_s15, %s259_s16  }
   0xe   :  { %s260_s19 = smov [#allocation5]  }
   0xf   :  { %s28_s20 = sshll.u32 %s260_s19, 4  ;;  %s29_s20 = int_to_ptr.vmem [resolvable:$true] %s28_s20 }
  0x10   :  { %s219_s21 = scalar_lea.vmem %s29_s20, 512  ;;  %p224_p6 = scmp.lt.s32.totalorder %s29_s20, %s29_s20 }
  0x11   :  { %p220_p5 = scmp.ne.s32.totalorder %s29_s20, %s219_s21  ;;  %p225_p7 = scmp.lt.s32.totalorder %s219_s21, %s219_s21 }
  0x13   :  { %p226_p8 = por %p225_p7, %p224_p6 }
  0x15   :  { %p227_p9 = pnand %p226_p8, %p220_p5 }
  0x17   :  { %230 = shalt.err (!%p227_p9)
}
  0x18   :  { %34 = dma.hbm_to_vmem [thread:$0]  %s306_s1, 512, %s29_s20, [#allocation6], %s258_s15, %s258_s15, %s259_s16  }
  0x19   :  { %251 = dma.done.wait [#allocation3], 256  }
  0x1a   :  { %252 = vsyncadd [#allocation3], 4294967040 }
  0x1b   :  { %253 = dma.done.wait [#allocation6], 512  }
  0x1c   :  { %254 = vsyncadd [#allocation6], 4294966784  ;;  %vm63_vm0 = vcmask 1041408   ;;  %vm56_vm1 = vcmask 211968   ;;  %v48_v0 = vld [vmem:[#allocation5 + $0x18] sm:$0x3] }
  0x1d   :  { %v47_v1 = vld [vmem:[#allocation5 + $0x10] sm:$0xff]  ;;  %175 = vmatprep.subr.msk.mxu0 %vm63_vm0, %v48_v0  ;;  %v46_v3 = vld [vmem:[#allocation5 + $0x8] sm:$0xff]  ;;  %v45_v4 = vld [vmem:[#allocation5] sm:$0xff]  ;;  %vm144_vm2 = vcmask 523264   ;;  %s261_s24 = smov [#allocation7]  }
  0x1e   :  { %v43_v2 = vld [vmem:[#allocation2] sm:$0xff]  ;;  %176 = vmatpush3.msk.msra.mxu0 %vm63_vm0, %v48_v0  ;;  %v44_v5 = vld [vmem:[#allocation2 + $0x8] sm:$0xff]  ;;  %s152_s25 = sshll.u32 %s261_s24, 4  ;;  %s153_s25 = int_to_ptr.vmem [resolvable:$true] %s152_s25 }
  0x1f   :  { %183 = vmatprep.mubr.msk.f32.mxu0 %vm56_vm1, %v43_v2  ;;  %177 = vmatprep.subr.mxu0 %v47_v1  ;;  %v165_v6 = vld [vmem:[%s307_s2] ss:$0 sm:$0xff]  ;;  %s231_s26 = scalar_lea.vmem %s153_s25, 256  ;;  %p236_p11 = scmp.lt.s32.totalorder %s153_s25, %s153_s25 }
  0x20   :  { %178 = vmatpush3.msra.mxu0 %v47_v1  ;;  %p232_p10 = scmp.ne.s32.totalorder %s153_s25, %s231_s26  ;;  %p237_p12 = scmp.lt.s32.totalorder %s231_s26, %s231_s26 }
  0x21   :  { %179 = vmatprep.subr.mxu0 %v46_v3 }
  0x22   :  { %180 = vmatpush3.msra.mxu0 %v46_v3  ;;  %p238_p13 = por %p237_p12, %p236_p11 }
  0x23   :  { %181 = vmatprep.subr.mxu0 %v45_v4 }
  0x24   :  { %182 = vmatpush3.msra.mxu0 %v45_v4  ;;  %p239_p0 = pnand %p238_p13, %p232_p10 }
  0x25   :  { %184 = vmatmul.mubr.msk.f32.vlgmr.msra.gmra.mxu0 %vm56_vm1, %v44_v5 }
  0xe5   :  { %v185_v7 = vpop.f32.mrf.mxu0 }
  0xe6   :  { %v139_v8 = vadd.f32 %v185_v7, %v165_v6 }
  0xe7   :  { %v133_v9 = vpop.f32.mrf.mxu0 }
  0xe8   :  { %v143_v10 = vmax.f32 %v139_v8, 0.0  ;;  %v134_v11 = vadd.f32 %v165_v6, %v133_v9 }
  0xea   :  { %v142_v12 = vmax.f32 %v134_v11, 0.0  ;;  %146 = vst.msk [vmem:[#allocation7 + $0x8] sm:$0xff] %vm144_vm2, %v143_v10 }
  0xec   :  { %145 = vst.msk [vmem:[#allocation7] sm:$0xff] %vm144_vm2, %v142_v12 }
  0xed   :  { %242 = shalt.err (!%p239_p0)
}
  0xee   :  { %158 = dma.vmem_to_hbm [thread:$0]  %s153_s25, 256, %s308_s3, [#allocation4], %s258_s15, %s258_s15, %s259_s16  }
  0xef   :  { %255 = dma.done.wait [#allocation4], 256  }
  0xf0   :  { %256 = vsyncadd [#allocation4], 4294967040 }
  0xf1   :  { %162 = vsyncpa [#allocation3], 1 }
  0xf2   :  { %163 = vsyncpa [#allocation6], 1 }
  0xf3   :  { %164 = vsyncpa [#allocation4], 1 }

</bundles_post_ra>
